<compile_context>
chip_gen: v7x
topology: tpu7x:2x2x1
jax: 0.10.0
libtpu: 0.0.40
codegen_flags: <defaults>
</compile_context>

<pallas_src>
import functools

import jax
import jax.numpy as jnp
from jax import lax
from jax.experimental import pallas as pl
from jax.experimental.pallas import tpu as pltpu


def _xcorr_kernel(z_ref, x_ref, o_ref, *, tap_offsets, acc_precision):
    """Cross-correlation for TB batch elements per grid step.

    z_ref: (TB, Kt, C)     template taps (Kt = Hz*Wz), channels last.
    x_ref: (TB, C, P_pad)  search features, spatial plane flattened + padded.
    o_ref: (1, TB, P_pad)  full-plane correlation; caller slices VALID window.
    """
    # Channel contraction on the MXU, f32 accumulator, batched over TB.
    y = jnp.einsum(
        "btc,bcp->btp", z_ref[...], x_ref[...],
        preferred_element_type=jnp.float32,
        precision=acc_precision)                       # (TB, Kt, P_pad) f32

    p = y.shape[-1]

    # Tap accumulation: acc[b, j] = sum_t y[b, t, j + off_t].  The (dh, dw)
    # shift is applied AFTER the channel reduction as a single XLU lane
    # rotate per tap row (pltpu.roll); the VPU only adds.
    rows = []
    for t, off in enumerate(tap_offsets):
        row = y[:, t, :]                               # (TB, P_pad)
        if off:
            # roll by -off  <=>  roll by (p - off): row[j] <- y[t, j + off]
            row = pltpu.roll(row, p - off, 1)
        rows.append(row)

    # Log-depth tree reduce (breaks the serial VPU dependency chain).
    while len(rows) > 1:
        nxt = [rows[i] + rows[i + 1] for i in range(0, len(rows) - 1, 2)]
        if len(rows) % 2:
            nxt.append(rows[-1])
        rows = nxt

    # One sublane-dense (TB, P_pad) slab store.
    o_ref[0] = rows[0].astype(o_ref.dtype)


def _pick_tb(batch, kt, c, p_pad, in_bytes, budget_bytes=40 << 20):
    """Largest TB that divides B, leaves >= 2 grid steps (v7x has 2 TCs on the
    'parallel' axis), and keeps double-buffered blocks under a VMEM budget
    sized against v7x's 64 MiB (the smallest of v5e/v6e/v7x)."""
    for tb in (16, 8, 4, 2):
        if batch % tb != 0 or batch // tb < 2:
            continue
        step_bytes = 2 * tb * (kt * c * in_bytes + c * p_pad * in_bytes + p_pad * 4)
        if step_bytes <= budget_bytes:
            return tb
    return 1


def rpn_xcorr(z_f, x_f, *, tb=None, compute_dtype=jnp.bfloat16):
    """Per-batch cross-correlation (the RPN hot path).

    z_f: (B, C, Hz, Wz)
    x_f: (B, C, Hx, Wx)
    returns: (B, 1, Ho, Wo) float32 with Ho = Hx - Hz + 1, Wo = Wx - Wz + 1.

    compute_dtype: dtype inputs are cast to before the kernel (MXU input
    dtype).  bfloat16 halves HBM traffic (the kernel is memory-bound at
    realistic SiamRPN sizes); accumulation is always f32.  Pass jnp.float32
    for full-precision inputs (uses Precision.HIGHEST on the MXU).
    """
    B, C, Hz, Wz = z_f.shape
    Bx, Cx, Hx, Wx = x_f.shape
    assert B == Bx and C == Cx
    Ho, Wo = Hx - Hz + 1, Wx - Wz + 1
    Kt, P = Hz * Wz, Hx * Wx
    P_pad = ((P + 127) // 128) * 128           # lane-dense, unmasked stores

    cdt = jnp.dtype(compute_dtype if compute_dtype is not None else z_f.dtype)
    in_bytes = cdt.itemsize

    if tb is None:
        tb = _pick_tb(B, Kt, C, P_pad, in_bytes)
    assert B % tb == 0, (B, tb)
    n_steps = B // tb

    # Layout plumbing once, in XLA on HBM (not per-tap inside the kernel):
    #   z: (B, C, Hz, Wz) -> (B, Kt, C)    taps-major so the kernel matmul is
    #      a plain (Kt, C) @ (C, P) channel contraction per batch element.
    #   x: (B, C, Hx, Wx) -> (B, C, P_pad) lane axis = flattened (padded)
    #      spatial plane.
    z_km = jnp.transpose(z_f.reshape(B, C, Kt), (0, 2, 1)).astype(cdt)
    x_pm = x_f.reshape(B, C, P).astype(cdt)
    if P_pad != P:
        x_pm = jnp.pad(x_pm, ((0, 0), (0, 0), (0, P_pad - P)))

    tap_offsets = tuple(dh * Wx + dw for dh in range(Hz) for dw in range(Wz))
    acc_precision = lax.Precision.HIGHEST if cdt == jnp.float32 else None
    kernel = functools.partial(_xcorr_kernel, tap_offsets=tap_offsets,
                               acc_precision=acc_precision)

    # VMEM budget: double-buffered in/out blocks + headroom, under v7x's
    # 64 MiB physical VMEM (and well under v5e/v6e's 128 MiB).
    step_bytes = 2 * tb * (Kt * C * in_bytes + C * P_pad * in_bytes + P_pad * 4)
    vmem_limit = int(min(max(4 * step_bytes, 32 << 20), 48 << 20))

    out3 = pl.pallas_call(
        kernel,
        out_shape=jax.ShapeDtypeStruct((n_steps, tb, P_pad), jnp.float32),
        grid_spec=pltpu.PrefetchScalarGridSpec(
            num_scalar_prefetch=0,
            grid=(n_steps,),
            in_specs=[
                pl.BlockSpec((tb, Kt, C), lambda i: (i, 0, 0)),
                pl.BlockSpec((tb, C, P_pad), lambda i: (i, 0, 0)),
            ],
            out_specs=pl.BlockSpec((1, tb, P_pad), lambda i: (i, 0, 0)),
        ),
        compiler_params=pltpu.CompilerParams(
            dimension_semantics=("parallel",),
            vmem_limit_bytes=vmem_limit),
    )(z_km, x_pm)

    # out3[s, b, h*Wx + w] == xcorr[s*tb + b, h, w] for h < Ho, w < Wo;
    # positions beyond that (and the P..P_pad pad) hold roll wrap-around
    # scrap — extract the VALID window only.
    out_flat = out3.reshape(B, P_pad)[:, :P]
    return out_flat.reshape(B, 1, Hx, Wx)[:, :, :Ho, :Wo]


def _ref_xcorr(z_f, x_f):
    # Pure-JAX reference (lax.conv is cross-correlation, same as F.conv2d).
    def one(zb, xb):
        return lax.conv_general_dilated(
            xb[None], zb[None], window_strides=(1, 1), padding="VALID",
            dimension_numbers=("NCHW", "OIHW", "NCHW"),
            precision=lax.Precision.HIGHEST)[0]
    return jax.vmap(one)(z_f, x_f)  # (B, 1, Ho, Wo)


if __name__ == "__main__":
    key = jax.random.PRNGKey(0)
    kz, kx = jax.random.split(key)
    # Small shapes: template (2,4,4,4), search (2,4,16,16) -> out (2,1,13,13).
    # Integer-valued f32 inputs keep the check independent of matmul input
    # dtype (bf16 represents these integers exactly; accumulation is f32), so
    # the comparison against the HIGHEST-precision reference is exact.
    z_f = jnp.round(3.0 * jax.random.normal(kz, (2, 4, 4, 4))).astype(jnp.float32)
    x_f = jnp.round(3.0 * jax.random.normal(kx, (2, 4, 16, 16))).astype(jnp.float32)

    out = jax.block_until_ready(rpn_xcorr(z_f, x_f))

    ref = _ref_xcorr(z_f, x_f)
    assert out.shape == ref.shape == (2, 1, 13, 13), out.shape
    assert jnp.allclose(out, ref, atol=1e-4, rtol=1e-4), "mismatch vs reference"

    print("KERNEL_OK")
</pallas_src>

<mosaic_0001>
module attributes {stable_mosaic.version = 11 : i64} {
  func.func @_xcorr_kernel(%arg0: i32, %arg1: memref<1x16x4xbf16, #tpu.memory_space<vmem>>, %arg2: memref<1x4x256xbf16, #tpu.memory_space<vmem>>, %arg3: memref<1x1x256xf32, #tpu.memory_space<vmem>>) attributes {dimension_semantics = [#tpu.dimension_semantics<parallel>], iteration_bounds = array<i64: 2>, scalar_prefetch = 0 : i64, scratch_operands = 0 : i64, tpu.core_type = #tpu.core_type<tc>, window_params = [{transform_indices = @transform_0, window_bounds = array<i64: 1, 16, 4>}, {transform_indices = @transform_1, window_bounds = array<i64: 1, 4, 256>}, {transform_indices = @transform_2, window_bounds = array<i64: 1, 1, 256>}]} {
    %c0 = arith.constant 0 : index
    %c0_0 = arith.constant 0 : index
    %c0_1 = arith.constant 0 : index
    %0 = vector.load %arg1[%c0, %c0_0, %c0_1] : memref<1x16x4xbf16, #tpu.memory_space<vmem>>, vector<1x16x4xbf16>
    %c0_2 = arith.constant 0 : index
    %c0_3 = arith.constant 0 : index
    %c0_4 = arith.constant 0 : index
    %1 = vector.load %arg2[%c0_2, %c0_3, %c0_4] : memref<1x4x256xbf16, #tpu.memory_space<vmem>>, vector<1x4x256xbf16>
    "tpu.trace_start"() <{level = 10 : i32, message = "btc,bcp->btp"}> : () -> ()
    %cst = arith.constant dense<0.000000e+00> : vector<1x16x256xf32>
    %2 = tpu.matmul %0, %1, %cst {dimension_numbers = #tpu.dot_dimension_numbers<[2], [1], [1], [2], [0, 0, 0, 1, 1, 2], [0], [0]>} : vector<1x16x4xbf16>, vector<1x4x256xbf16>, vector<1x16x256xf32> -> vector<1x16x256xf32>
    "tpu.trace_stop"() : () -> ()
    %3 = vector.extract_strided_slice %2 {offsets = [0, 0, 0], sizes = [1, 1, 256], strides = [1, 1, 1]} : vector<1x16x256xf32> to vector<1x1x256xf32>
    %4 = vector.shape_cast %3 : vector<1x1x256xf32> to vector<1x256xf32>
    %5 = vector.extract_strided_slice %2 {offsets = [0, 1, 0], sizes = [1, 1, 256], strides = [1, 1, 1]} : vector<1x16x256xf32> to vector<1x1x256xf32>
    %6 = vector.shape_cast %5 : vector<1x1x256xf32> to vector<1x256xf32>
    %c255_i32 = arith.constant 255 : i32
    %7 = tpu.dynamic_rotate %6 by %c255_i32 dim 1 : vector<1x256xf32>, i32 -> vector<1x256xf32>
    %8 = vector.extract_strided_slice %2 {offsets = [0, 2, 0], sizes = [1, 1, 256], strides = [1, 1, 1]} : vector<1x16x256xf32> to vector<1x1x256xf32>
    %9 = vector.shape_cast %8 : vector<1x1x256xf32> to vector<1x256xf32>
    %c254_i32 = arith.constant 254 : i32
    %10 = tpu.dynamic_rotate %9 by %c254_i32 dim 1 : vector<1x256xf32>, i32 -> vector<1x256xf32>
    %11 = vector.extract_strided_slice %2 {offsets = [0, 3, 0], sizes = [1, 1, 256], strides = [1, 1, 1]} : vector<1x16x256xf32> to vector<1x1x256xf32>
    %12 = vector.shape_cast %11 : vector<1x1x256xf32> to vector<1x256xf32>
    %c253_i32 = arith.constant 253 : i32
    %13 = tpu.dynamic_rotate %12 by %c253_i32 dim 1 : vector<1x256xf32>, i32 -> vector<1x256xf32>
    %14 = vector.extract_strided_slice %2 {offsets = [0, 4, 0], sizes = [1, 1, 256], strides = [1, 1, 1]} : vector<1x16x256xf32> to vector<1x1x256xf32>
    %15 = vector.shape_cast %14 : vector<1x1x256xf32> to vector<1x256xf32>
    %c240_i32 = arith.constant 240 : i32
    %16 = tpu.dynamic_rotate %15 by %c240_i32 dim 1 : vector<1x256xf32>, i32 -> vector<1x256xf32>
    %17 = vector.extract_strided_slice %2 {offsets = [0, 5, 0], sizes = [1, 1, 256], strides = [1, 1, 1]} : vector<1x16x256xf32> to vector<1x1x256xf32>
    %18 = vector.shape_cast %17 : vector<1x1x256xf32> to vector<1x256xf32>
    %c239_i32 = arith.constant 239 : i32
    %19 = tpu.dynamic_rotate %18 by %c239_i32 dim 1 : vector<1x256xf32>, i32 -> vector<1x256xf32>
    %20 = vector.extract_strided_slice %2 {offsets = [0, 6, 0], sizes = [1, 1, 256], strides = [1, 1, 1]} : vector<1x16x256xf32> to vector<1x1x256xf32>
    %21 = vector.shape_cast %20 : vector<1x1x256xf32> to vector<1x256xf32>
    %c238_i32 = arith.constant 238 : i32
    %22 = tpu.dynamic_rotate %21 by %c238_i32 dim 1 : vector<1x256xf32>, i32 -> vector<1x256xf32>
    %23 = vector.extract_strided_slice %2 {offsets = [0, 7, 0], sizes = [1, 1, 256], strides = [1, 1, 1]} : vector<1x16x256xf32> to vector<1x1x256xf32>
    %24 = vector.shape_cast %23 : vector<1x1x256xf32> to vector<1x256xf32>
    %c237_i32 = arith.constant 237 : i32
    %25 = tpu.dynamic_rotate %24 by %c237_i32 dim 1 : vector<1x256xf32>, i32 -> vector<1x256xf32>
    %26 = vector.extract_strided_slice %2 {offsets = [0, 8, 0], sizes = [1, 1, 256], strides = [1, 1, 1]} : vector<1x16x256xf32> to vector<1x1x256xf32>
    %27 = vector.shape_cast %26 : vector<1x1x256xf32> to vector<1x256xf32>
    %c224_i32 = arith.constant 224 : i32
    %28 = tpu.dynamic_rotate %27 by %c224_i32 dim 1 : vector<1x256xf32>, i32 -> vector<1x256xf32>
    %29 = vector.extract_strided_slice %2 {offsets = [0, 9, 0], sizes = [1, 1, 256], strides = [1, 1, 1]} : vector<1x16x256xf32> to vector<1x1x256xf32>
    %30 = vector.shape_cast %29 : vector<1x1x256xf32> to vector<1x256xf32>
    %c223_i32 = arith.constant 223 : i32
    %31 = tpu.dynamic_rotate %30 by %c223_i32 dim 1 : vector<1x256xf32>, i32 -> vector<1x256xf32>
    %32 = vector.extract_strided_slice %2 {offsets = [0, 10, 0], sizes = [1, 1, 256], strides = [1, 1, 1]} : vector<1x16x256xf32> to vector<1x1x256xf32>
    %33 = vector.shape_cast %32 : vector<1x1x256xf32> to vector<1x256xf32>
    %c222_i32 = arith.constant 222 : i32
    %34 = tpu.dynamic_rotate %33 by %c222_i32 dim 1 : vector<1x256xf32>, i32 -> vector<1x256xf32>
    %35 = vector.extract_strided_slice %2 {offsets = [0, 11, 0], sizes = [1, 1, 256], strides = [1, 1, 1]} : vector<1x16x256xf32> to vector<1x1x256xf32>
    %36 = vector.shape_cast %35 : vector<1x1x256xf32> to vector<1x256xf32>
    %c221_i32 = arith.constant 221 : i32
    %37 = tpu.dynamic_rotate %36 by %c221_i32 dim 1 : vector<1x256xf32>, i32 -> vector<1x256xf32>
    %38 = vector.extract_strided_slice %2 {offsets = [0, 12, 0], sizes = [1, 1, 256], strides = [1, 1, 1]} : vector<1x16x256xf32> to vector<1x1x256xf32>
    %39 = vector.shape_cast %38 : vector<1x1x256xf32> to vector<1x256xf32>
    %c208_i32 = arith.constant 208 : i32
    %40 = tpu.dynamic_rotate %39 by %c208_i32 dim 1 : vector<1x256xf32>, i32 -> vector<1x256xf32>
    %41 = vector.extract_strided_slice %2 {offsets = [0, 13, 0], sizes = [1, 1, 256], strides = [1, 1, 1]} : vector<1x16x256xf32> to vector<1x1x256xf32>
    %42 = vector.shape_cast %41 : vector<1x1x256xf32> to vector<1x256xf32>
    %c207_i32 = arith.constant 207 : i32
    %43 = tpu.dynamic_rotate %42 by %c207_i32 dim 1 : vector<1x256xf32>, i32 -> vector<1x256xf32>
    %44 = vector.extract_strided_slice %2 {offsets = [0, 14, 0], sizes = [1, 1, 256], strides = [1, 1, 1]} : vector<1x16x256xf32> to vector<1x1x256xf32>
    %45 = vector.shape_cast %44 : vector<1x1x256xf32> to vector<1x256xf32>
    %c206_i32 = arith.constant 206 : i32
    %46 = tpu.dynamic_rotate %45 by %c206_i32 dim 1 : vector<1x256xf32>, i32 -> vector<1x256xf32>
    %47 = vector.extract_strided_slice %2 {offsets = [0, 15, 0], sizes = [1, 1, 256], strides = [1, 1, 1]} : vector<1x16x256xf32> to vector<1x1x256xf32>
    %48 = vector.shape_cast %47 : vector<1x1x256xf32> to vector<1x256xf32>
    %c205_i32 = arith.constant 205 : i32
    %49 = tpu.dynamic_rotate %48 by %c205_i32 dim 1 : vector<1x256xf32>, i32 -> vector<1x256xf32>
    %50 = arith.addf %4, %7 : vector<1x256xf32>
    %51 = arith.addf %10, %13 : vector<1x256xf32>
    %52 = arith.addf %16, %19 : vector<1x256xf32>
    %53 = arith.addf %22, %25 : vector<1x256xf32>
    %54 = arith.addf %28, %31 : vector<1x256xf32>
    %55 = arith.addf %34, %37 : vector<1x256xf32>
    %56 = arith.addf %40, %43 : vector<1x256xf32>
    %57 = arith.addf %46, %49 : vector<1x256xf32>
    %58 = arith.addf %50, %51 : vector<1x256xf32>
    %59 = arith.addf %52, %53 : vector<1x256xf32>
    %60 = arith.addf %54, %55 : vector<1x256xf32>
    %61 = arith.addf %56, %57 : vector<1x256xf32>
    %62 = arith.addf %58, %59 : vector<1x256xf32>
    %63 = arith.addf %60, %61 : vector<1x256xf32>
    %64 = arith.addf %62, %63 : vector<1x256xf32>
    %c0_5 = arith.constant 0 : index
    %c0_6 = arith.constant 0 : index
    %c0_7 = arith.constant 0 : index
    %65 = vector.load %arg3[%c0_5, %c0_6, %c0_7] : memref<1x1x256xf32, #tpu.memory_space<vmem>>, vector<1x1x256xf32>
    %66 = vector.shape_cast %65 : vector<1x1x256xf32> to vector<1x256xf32>
    %67 = vector.shape_cast %64 : vector<1x256xf32> to vector<1x1x256xf32>
    tpu.vector_store %arg3[%c0_5, %c0_6, %c0_7], %67 {strides = array<i32>} : memref<1x1x256xf32, #tpu.memory_space<vmem>>, vector<1x1x256xf32>,
    return
  }
  func.func @transform_0(%arg0: i32) -> (i32, i32, i32) {
    %c0_i32 = arith.constant 0 : i32
    %c0_i32_0 = arith.constant 0 : i32
    %c0_i32_1 = arith.constant 0 : i32
    return %arg0, %c0_i32, %c0_i32_0 : i32, i32, i32
  }
  func.func @transform_1(%arg0: i32) -> (i32, i32, i32) {
    %c0_i32 = arith.constant 0 : i32
    %c0_i32_0 = arith.constant 0 : i32
    %c0_i32_1 = arith.constant 0 : i32
    return %arg0, %c0_i32, %c0_i32_0 : i32, i32, i32
  }
  func.func @transform_2(%arg0: i32) -> (i32, i32, i32) {
    %c0_i32 = arith.constant 0 : i32
    %c0_i32_0 = arith.constant 0 : i32
    %c0_i32_1 = arith.constant 0 : i32
    return %arg0, %c0_i32, %c0_i32_0 : i32, i32, i32
  }
}

</mosaic_0001>

<bundles_post_ra>
// kernel: tpu_custom_call.1
= control target key start
LH: loop header
LB: loop body
LE: loop exit
PB: predicated region body
PF: predicated region fallthrough
CT: control target
= control target key end

     0   :  { %7 = vsyncpa [#allocation3], 0  ;;  %s932_s0 = inlined_call_operand.vmem [shape: bf16[2,16,4], index: 0, kind: input, shape index: {}]   ;;  %s933_s1 = inlined_call_operand.vmem [shape: bf16[2,4,256], index: 1, kind: input, shape index: {}]   ;;  %s934_s2 = inlined_call_operand.hbm [shape: f32[2,1,256], index: 2, kind: output, shape index: {}]  }
   0x1   :  { %9 = vsyncpa [#allocation3 + $0x1], 0  ;;  %s715_s9 = smov 0   ;;  %s717_s10 = smov 0  }
   0x2   :  { %s719_s11 = smov 0   ;;  %s721_s12 = smov 0  }
   0x3 LB: > { %s736_s13 = sadd.s32 4294967295, %s680_s12   ;;  %s540_s14 = sadd.s32 4294967294, %s680_s12   ;;  %s680_s12 = sphi %s721_s12, %s940_s12   ;;  %s676_s11 = sphi %s719_s11, %s939_s11   ;;  %s672_s10 = sphi %s717_s10, %s938_s10   ;;  %s668_s9 = sphi %s715_s9, %s937_s9  }
   0x4   : > { %s740_s15 = sadd.s32 1, %s680_s12   ;;  %s74_s16 = sadd.s32 1, %s676_s11 }
   0x5   : > { %s71_s17 = ssub.s32 %s680_s12, %s740_s15  ;;  %p84_p0 = scmp.ne.s32.totalorder %s676_s11, %s672_s10 }
   0x6   : > { %p72_p1 = scmp.eq.s32.totalorder %s71_s17, 0  ;;  %p85_p2 = scmp.eq.s32.totalorder %s736_s13, 1 }
   0x7   : > { %p90_p3 = scmp.ne.s32.totalorder %s672_s10, %s668_s9  ;;  %p91_p4 = scmp.eq.s32.totalorder %s540_s14, 1 }
   0x8   : > { %s751_s18 = scalar_select %p72_p1, %s676_s11, %s74_s16  }
   0x9   : > { %p753_p5 = por %p85_p2, %p84_p0  ;;  %p757_p6 = por %p91_p4, %p90_p3 }
   0xa   : > { %p543_p7 = scmp.ge.s32.totalorder %s680_s12, 1  ;;  %p125_p8 = scmp.lt.s32.totalorder %s680_s12, 3 }
   0xc   : > { %p126_p9 = pnand %p543_p7, %p125_p8 }
   0xd   : > { %p152_p10 = scmp.lt.s32.totalorder (!%p126_p9), %s736_s13, 1  ;;  %v682_v0 = vmov (!%p126_p9), 0   ;;  %vm184_vm0 = vcmask (!%p126_p9), 1041408   ;;  %vm180_vm1 = vcmask (!%p126_p9), 31744   ;;  %s683_s30 = smov (!%p126_p9), 126   ;;  %v244_v55 = vlaneseq (!%p126_p9) }
   0xe   : > { %129 = sbr.rel (%p126_p9) target bundleno = 446 (0x1be), region = 28  ;;  %223 = vmatprep.mubr.bf16.mxu0 (!%p126_p9), %v682_v0  ;;  %s684_s3 = smov (!%p126_p9), 127  }
   0xf   : > { %s685_s4 = smov (!%p126_p9), 125   ;;  %s686_s5 = smov (!%p126_p9), 112   ;;  %v812_v58 = vand.u32 (!%p126_p9), 127, %v244_v55 }
  0x10   : > { %s687_s6 = smov (!%p126_p9), 111   ;;  %s688_s7 = smov (!%p126_p9), 110  }
  0x11   : > { %s689_s8 = smov (!%p126_p9), 109   ;;  %s690_s14 = smov (!%p126_p9), 96   ;;  %vm268_vm2 = vcmp.lt.s32.totalorder (!%p126_p9), %v812_v58, 125  ;;  %vm257_vm3 = vcmp.lt.s32.totalorder (!%p126_p9), %v812_v58, 126  ;;  %vm279_vm4 = vcmp.lt.s32.totalorder (!%p126_p9), %v812_v58, 112  ;;  %vm290_vm5 = vcmp.lt.s32.totalorder (!%p126_p9), %v812_v58, 111 }
  0x12   : > { %s691_s16 = smov (!%p126_p9), 95   ;;  %s692_s17 = smov (!%p126_p9), 94   ;;  %vm301_vm6 = vcmp.lt.s32.totalorder (!%p126_p9), %v812_v58, 110  ;;  %vm312_vm7 = vcmp.lt.s32.totalorder (!%p126_p9), %v812_v58, 109  ;;  %vm246_vm8 = vcmp.lt.s32.totalorder (!%p126_p9), %v812_v58, 127  ;;  %vm319_vm9 = vcmp.lt.s32.totalorder (!%p126_p9), %v812_v58, 96 }
  0x13   : > { %s696_s24 = smov (!%p126_p9), 78   ;;  %s697_s25 = smov (!%p126_p9), 77   ;;  %vm332_vm10 = vcmp.lt.s32.totalorder (!%p126_p9), %v812_v58, 95  ;;  %vm343_vm11 = vcmp.lt.s32.totalorder (!%p126_p9), %v812_v58, 94  ;;  %vm354_vm12 = vcmp.lt.s32.totalorder (!%p126_p9), %v812_v58, 93  ;;  %vm365_vm13 = vcmp.lt.s32.totalorder (!%p126_p9), %v812_v58, 80 }
  0x14   : > { %vm376_vm14 = vcmp.lt.s32.totalorder (!%p126_p9), %v812_v58, 79  ;;  %vm387_vm15 = vcmp.lt.s32.totalorder (!%p126_p9), %v812_v58, 78  ;;  %s560_s28 = sshll.u32 (!%p126_p9), %s736_s13, 5 }
  0x15   : > { %s153_s21 = scalar_select %p152_p10, %s736_s13, 1 }
  0x16   : > { %s699_s13 = smov [#allocation2]  }
  0x17   : > { %s558_s22 = sshll.u32 %s153_s21, 3  ;;  %s559_s23 = sshll.u32 %s153_s21, 2 }
  0x18   : > { %s156_s26 = scalar_lea.vmem %s932_s0, %s558_s22  ;;  %s161_s29 = scalar_lea.vmem %s933_s1, %s559_s23 }
  0x19   : > { %v550_v1 = vld.sshfl [vmem:[%s161_s29] sm:$0x33 pattern:$0x76325410]  ;;  %s693_s21 = smov 93   ;;  %s694_s22 = smov 80  }
  0x1a   : > { %v179_v2 = vcombine.high %v550_v1, %v550_v1  ;;  %v186_v3 = vsel %vm184_vm0, %v550_v1, 0  ;;  %v617_v4 = vld [vmem:[%s156_s26] sm:$0xff]   ;;  %s695_s23 = smov 79   ;;  %s149_s26 = sand.u32 1, %s672_s10  }
  0x1b   : > { %s544_s27 = sshll.u32 %s149_s26, 1 }
  0x1c   : > { %551 = vmatprep.subr.msk.bf16.mxu0 %vm184_vm0, %v179_v2  ;;  %vm398_vm0 = vcmp.lt.s32.totalorder %v812_v58, 77  ;;  %s151_s29 = scalar_lea.vmem [#allocation2], %s544_s27 }
  0x1d   : > { %192 = vmatpush1.bf16.msra.mxu0 %v186_v3 }
  0x20   : > { %552 = vmatmul.mubr.msk.bf16.vlgmr.msra.gmra.mrb[0].mxu0 %vm180_vm1, %v617_v4  ;;  %vm451_vm1 = vcmp.lt.s32.totalorder %v244_v55, 256 }
  0xf3   : > { %v771_v5 = vpop.f32.mrb[0].mxu0 }
  0xf4   : > { %v773_v6 = vpop.f32.mrb[1].mxu0  ;;  %v249_v7 = vrot.slane %v771_v5, 2  ;;  %v236_v8 = vrot.slane %v771_v5, 1  ;;  %v260_v11 = vrot.slane %v771_v5, 3  ;;  %v271_v13 = vrot.slane %v771_v5, 4 }
  0xf5   : > { %v777_v9 = vpop.f32.mrb[2].mxu0  ;;  %v250_v12 = vrot.slane %v773_v6, 2  ;;  %v261_v14 = vrot.slane %v773_v6, 3  ;;  %v282_v15 = vrot.slane %v771_v5, 5  ;;  %v272_v16 = vrot.slane %v773_v6, 4 }
  0xf6   : > { %253 = vrot.lane.b32.xlu1 %v249_v7, %s683_s30  ;;  %240 = vrot.lane.b32.xlu0 %v236_v8, %s684_s3  ;;  %v780_v10 = vpop.f32.mrb[3].mxu0  ;;  %v293_v17 = vrot.slane %v771_v5, 6  ;;  %v283_v18 = vrot.slane %v773_v6, 5  ;;  %v304_v19 = vrot.slane %v771_v5, 7  ;;  %v294_v20 = vrot.slane %v773_v6, 6 }
  0xf7   : > { %v305_v21 = vrot.slane %v773_v6, 7  ;;  %v237_v22 = vrot.slane %v773_v6, 1  ;;  %v324_v23 = vrot.slane %v777_v9, 1  ;;  %v325_v24 = vrot.slane %v780_v10, 1 }
  0xf8   : > { %v335_v25 = vrot.slane %v777_v9, 2  ;;  %v336_v26 = vrot.slane %v780_v10, 2  ;;  %v346_v27 = vrot.slane %v777_v9, 3  ;;  %v347_v28 = vrot.slane %v780_v10, 3 }
  0xf9   : > { %v357_v29 = vrot.slane %v777_v9, 4  ;;  %v358_v30 = vrot.slane %v780_v10, 4  ;;  %v368_v31 = vrot.slane %v777_v9, 5  ;;  %v369_v32 = vrot.slane %v780_v10, 5 }
  0xfa   : > { %264 = vrot.lane.b32.xlu0 %v260_v11, %s685_s4  ;;  %255 = vrot.lane.b32.xlu1 %v250_v12, %s683_s30  ;;  %v379_v33 = vrot.slane %v777_v9, 6  ;;  %v380_v34 = vrot.slane %v780_v10, 6  ;;  %v390_v35 = vrot.slane %v777_v9, 7  ;;  %v391_v36 = vrot.slane %v780_v10, 7  ;;  %s469_s30 = sshll.u32 %s151_s29, 4  ;;  %s892_s30 = int_to_ptr.vmem [resolvable:$true] %s469_s30 }
  0xfb   : > { %v698_v11 = vmov 1966171168  }
  0xfc   : > { %v435_v12 = vunpack.c.l.s4 %v698_v11 }
  0xfe   : > { %275 = vrot.lane.b32.xlu0 %v271_v13, %s686_s5  ;;  %266 = vrot.lane.b32.xlu1 %v261_v14, %s685_s4 }
 0x102   : > { %286 = vrot.lane.b32.xlu0 %v282_v15, %s687_s6  ;;  %277 = vrot.lane.b32.xlu1 %v272_v16, %s686_s5  ;;  %s890_s5 = scalar_lea.hbm %s934_s2, %s560_s28 }
 0x106   : > { %297 = vrot.lane.b32.xlu0 %v293_v17, %s688_s7  ;;  %288 = vrot.lane.b32.xlu1 %v283_v18, %s687_s6  ;;  %s455_s6 = scalar_lea.sflag [#allocation3], %s149_s26 }
 0x10a   : > { %308 = vrot.lane.b32.xlu0 %v304_v19, %s689_s8  ;;  %299 = vrot.lane.b32.xlu1 %v294_v20, %s688_s7  ;;  %s618_s7 = scalar_lea.vmem %s892_s30, 32 }
 0x10b   : > { %p619_p11 = scmp.ne.s32.totalorder %s892_s30, %s618_s7 }
 0x10d   : > { %p620_p12 = pnand %p619_p11, %p753_p5 }
 0x10e   : > { %310 = vrot.lane.b32.xlu1 %v305_v21, %s689_s8  ;;  %315 = vrot.lane.b32.xlu0 %v777_v9, %s690_s14  ;;  %s622_s8 = sshll.u32 %s699_s13, 4  ;;  %s623_s8 = int_to_ptr.vmem [resolvable:$false] %s622_s8 }
 0x10f   : > { %p621_p13 = pneg %p620_p12  ;;  %p625_p0 = scmp.lt.s32.totalorder %s892_s30, %s623_s8 }
 0x112   : > { %242 = vrot.lane.b32.xlu0 %v237_v22, %s684_s3  ;;  %317 = vrot.lane.b32.xlu1 %v780_v10, %s690_s14  ;;  %s624_s14 = scalar_lea.vmem %s623_s8, 64 }
 0x113   : > { %p626_p1 = scmp.lt.s32.totalorder %s624_s14, %s618_s7 }
 0x115   : > { %p627_p2 = por %p626_p1, %p625_p0 }
 0x116   : > { %328 = vrot.lane.b32.xlu0 %v324_v23, %s691_s16  ;;  %330 = vrot.lane.b32.xlu1 %v325_v24, %s691_s16 }
 0x117   : > { %p628_p3 = pnand %p627_p2, %p621_p13 }
 0x11a   : > { %339 = vrot.lane.b32.xlu0 %v335_v25, %s692_s17  ;;  %341 = vrot.lane.b32.xlu1 %v336_v26, %s692_s17 }
 0x11e   : > { %350 = vrot.lane.b32.xlu0 %v346_v27, %s693_s21  ;;  %352 = vrot.lane.b32.xlu1 %v347_v28, %s693_s21 }
 0x122   : > { %361 = vrot.lane.b32.xlu0 %v357_v29, %s694_s22  ;;  %363 = vrot.lane.b32.xlu1 %v358_v30, %s694_s22 }
 0x126   : > { %372 = vrot.lane.b32.xlu0 %v368_v31, %s695_s23  ;;  %374 = vrot.lane.b32.xlu1 %v369_v32, %s695_s23 }
 0x12a   : > { %383 = vrot.lane.b32.xlu0 %v379_v33, %s696_s24  ;;  %385 = vrot.lane.b32.xlu1 %v380_v34, %s696_s24 }
 0x12e   : > { %394 = vrot.lane.b32.xlu0 %v390_v35, %s697_s25  ;;  %396 = vrot.lane.b32.xlu1 %v391_v36, %s697_s25 }
 0x168   : > { %v254_v37 = vpop.permute.xlu1 %253  ;;  %v241_v38 = vpop.permute.xlu0 %240 }
 0x16c   : > { %v265_v39 = vpop.permute.xlu0 %264  ;;  %v256_v40 = vpop.permute.xlu1 %255 }
 0x16d   : > { %v258_v1 = vsel %vm257_vm3, %v254_v37, %v256_v40  ;;  %v259_v2 = vsel %vm257_vm3, %v256_v40, %v254_v37 }
 0x170   : > { %v276_v41 = vpop.permute.xlu0 %275  ;;  %v267_v42 = vpop.permute.xlu1 %266 }
 0x171   : > { %v269_v63 = vsel %vm268_vm2, %v265_v39, %v267_v42  ;;  %v270_v0 = vsel %vm268_vm2, %v267_v42, %v265_v39 }
 0x172   : > { %v403_v7 = vadd.f32 %v269_v63, %v258_v1  ;;  %v404_v8 = vadd.f32 %v270_v0, %v259_v2 }
 0x174   : > { %v287_v43 = vpop.permute.xlu0 %286  ;;  %v278_v44 = vpop.permute.xlu1 %277 }
 0x175   : > { %v280_v17 = vsel %vm279_vm4, %v276_v41, %v278_v44  ;;  %v281_v18 = vsel %vm279_vm4, %v278_v44, %v276_v41 }
 0x178   : > { %v298_v45 = vpop.permute.xlu0 %297  ;;  %v289_v46 = vpop.permute.xlu1 %288 }
 0x179   : > { %v291_v13 = vsel %vm290_vm5, %v287_v43, %v289_v46  ;;  %v292_v14 = vsel %vm290_vm5, %v289_v46, %v287_v43 }
 0x17a   : > { %v405_v25 = vadd.f32 %v291_v13, %v280_v17  ;;  %v406_v26 = vadd.f32 %v292_v14, %v281_v18 }
 0x17c   : > { %v309_v47 = vpop.permute.xlu0 %308  ;;  %v300_v48 = vpop.permute.xlu1 %299 }
 0x17d   : > { %v302_v21 = vsel %vm301_vm6, %v298_v45, %v300_v48  ;;  %v303_v22 = vsel %vm301_vm6, %v300_v48, %v298_v45 }
 0x180   : > { %v311_v49 = vpop.permute.xlu1 %310  ;;  %v316_v50 = vpop.permute.xlu0 %315 }
 0x181   : > { %v313_v15 = vsel %vm312_vm7, %v309_v47, %v311_v49  ;;  %v314_v16 = vsel %vm312_vm7, %v311_v49, %v309_v47 }
 0x182   : > { %v407_v27 = vadd.f32 %v313_v15, %v302_v21  ;;  %v408_v28 = vadd.f32 %v314_v16, %v303_v22 }
 0x184   : > { %v243_v51 = vpop.permute.xlu0 %242  ;;  %v318_v52 = vpop.permute.xlu1 %317 }
 0x185   : > { %v247_v3 = vsel %vm246_vm8, %v241_v38, %v243_v51  ;;  %v248_v4 = vsel %vm246_vm8, %v243_v51, %v241_v38  ;;  %v321_v30 = vsel %vm319_vm9, %v318_v52, %v316_v50 }
 0x186   : > { %v401_v19 = vadd.f32 %v247_v3, %v771_v5  ;;  %v402_v20 = vadd.f32 %v248_v4, %v773_v6  ;;  %v320_v6 = vsel %vm319_vm9, %v316_v50, %v318_v52 }
 0x188   : > { %v329_v53 = vpop.permute.xlu0 %328  ;;  %v331_v54 = vpop.permute.xlu1 %330  ;;  %v417_v33 = vadd.f32 %v403_v7, %v401_v19  ;;  %v418_v34 = vadd.f32 %v404_v8, %v402_v20 }
 0x189   : > { %v333_v23 = vsel %vm332_vm10, %v329_v53, %v331_v54  ;;  %v334_v24 = vsel %vm332_vm10, %v331_v54, %v329_v53 }
 0x18a   : > { %v409_v35 = vadd.f32 %v333_v23, %v320_v6  ;;  %v410_v36 = vadd.f32 %v334_v24, %v321_v30 }
 0x18c   : > { %v340_v56 = vpop.permute.xlu0 %339  ;;  %v342_v57 = vpop.permute.xlu1 %341 }
 0x18d   : > { %v344_v37 = vsel %vm343_vm11, %v340_v56, %v342_v57  ;;  %v345_v38 = vsel %vm343_vm11, %v342_v57, %v340_v56  ;;  %v419_v56 = vadd.f32 %v407_v27, %v405_v25  ;;  %v420_v57 = vadd.f32 %v408_v28, %v406_v26 }
 0x18f   : > { %v425_v1 = vadd.f32 %v419_v56, %v417_v33  ;;  %v426_v2 = vadd.f32 %v420_v57, %v418_v34 }
 0x190   : > { %v351_v59 = vpop.permute.xlu0 %350  ;;  %v353_v60 = vpop.permute.xlu1 %352 }
 0x191   : > { %v355_v31 = vsel %vm354_vm12, %v351_v59, %v353_v60  ;;  %v356_v32 = vsel %vm354_vm12, %v353_v60, %v351_v59  ;;  %v436_v59 = vunpack.c.0.s8 %v435_v12  ;;  %v438_v60 = vshrl.u32 %v244_v55, 7 }
 0x192   : > { %v411_v41 = vadd.f32 %v355_v31, %v344_v37  ;;  %v412_v42 = vadd.f32 %v356_v32, %v345_v38 }
 0x193   : > { %v439_v8 = vsub.s32 %v436_v59, %v438_v60 }
 0x194   : > { %v362_v61 = vpop.permute.xlu0 %361  ;;  %v364_v62 = vpop.permute.xlu1 %363 }
 0x195   : > { %v366_v43 = vsel %vm365_vm13, %v362_v61, %v364_v62  ;;  %v367_v44 = vsel %vm365_vm13, %v364_v62, %v362_v61  ;;  %v421_v61 = vadd.f32 %v411_v41, %v409_v35  ;;  %v422_v62 = vadd.f32 %v412_v42, %v410_v36 }
 0x198   : > { %v373_v9 = vpop.permute.xlu0 %372  ;;  %v375_v10 = vpop.permute.xlu1 %374 }
 0x199   : > { %v377_v39 = vsel %vm376_vm14, %v373_v9, %v375_v10  ;;  %v378_v40 = vsel %vm376_vm14, %v375_v10, %v373_v9 }
 0x19a   : > { %v413_v51 = vadd.f32 %v377_v39, %v366_v43  ;;  %v414_v52 = vadd.f32 %v378_v40, %v367_v44 }
 0x19c   : > { %v384_v29 = vpop.permute.xlu0 %383  ;;  %v386_v5 = vpop.permute.xlu1 %385 }
 0x19d   : > { %v388_v47 = vsel %vm387_vm15, %v384_v29, %v386_v5  ;;  %v389_v48 = vsel %vm387_vm15, %v386_v5, %v384_v29 }
 0x1a0   : > { %v395_v45 = vpop.permute.xlu0 %394  ;;  %v397_v46 = vpop.permute.xlu1 %396 }
 0x1a1   : > { %v399_v49 = vsel %vm398_vm0, %v395_v45, %v397_v46  ;;  %v400_v50 = vsel %vm398_vm0, %v397_v46, %v395_v45 }
 0x1a2   : > { %v415_v53 = vadd.f32 %v399_v49, %v388_v47  ;;  %v416_v54 = vadd.f32 %v400_v50, %v389_v48 }
 0x1a4   : > { %v423_v63 = vadd.f32 %v415_v53, %v413_v51  ;;  %v424_v0 = vadd.f32 %v416_v54, %v414_v52 }
 0x1a6   : > { %v427_v58 = vadd.f32 %v423_v63, %v421_v61  ;;  %v428_v3 = vadd.f32 %v424_v0, %v422_v62 }
 0x1a8   : > { %v429_v4 = vadd.f32 %v427_v58, %v425_v1  ;;  %v430_v7 = vadd.f32 %v428_v3, %v426_v2 }
 0x1aa   : > { %v433_v9 = vcombine.low %v429_v4, %v430_v7 }
 0x1ac   : > { %v440_v10 = vrot.slane %v433_v9, %v439_v8 }
 0x1ae   : > { %v447_v11 = vrot.slane %v440_v10, %v439_v8 }
 0x1b0   : > { %453 = vst.msk [vmem:[%s151_s29] sm:$0x3] %vm451_vm1, %v447_v11 }
 0x1b1   : > { %631 = shalt.err (!%p628_p3)
}
 0x1b2   : > { %s632_s16 = scalar_lea.hbm %s890_s5, 32  ;;  %s636_s22 = scalar_lea.hbm %s934_s2, 64 }
 0x1b3   : > { %p633_p4 = scmp.ne.s32.totalorder %s890_s5, %s632_s16  ;;  %p637_p9 = scmp.lt.u32.totalorder %s890_s5, %s934_s2 }
 0x1b4   : > { %p638_p10 = scmp.lt.u32.totalorder %s636_s22, %s632_s16  ;;  %p640_p12 = scmp.lt.u32.totalorder %s632_s16, %s890_s5 }
 0x1b5   : > { %p634_p7 = pnand %p633_p4, %p753_p5 }
 0x1b6   : > { %p639_p11 = por %p638_p10, %p637_p9 }
 0x1b7   : > { %p635_p8 = pneg %p634_p7 }
 0x1b8   : > { %p641_p13 = por %p640_p12, %p639_p11 }
 0x1ba   : > { %p642_p0 = pnand %p641_p13, %p635_p8 }
 0x1bc   : > { %645 = shalt.err (!%p642_p0)
}
 0x1bd   : > { %561 = dma.vmem_to_hbm [thread:$0]  (%p753_p5), %s892_s30, 32, %s890_s5, %s455_s6  }
 0x1be PF: > { %p567_p1 = scmp.ge.s32.totalorder %s680_s12, 2  ;;  %s481_s25 = sand.u32 1, %s668_s9  }
 0x1bf   : > { %s482_s26 = scalar_lea.sflag [#allocation3], %s481_s25 }
 0x1c0   : > { %p564_p2 = pnand %p567_p1, %p757_p6 }
 0x1c2   : > { %663 = dma.done.wait (!%p564_p2), %s482_s26, 32  }
 0x1c3   : > { %665 = vsyncadd (!%p564_p2), %s482_s26, 4294967264  ;;  %p12_p3 = scmp.ge.s32.totalorder %s740_s15, 4   ;;  %s937_s9 = smov %s672_s10 }
 0x1c4   : > { %s938_s10 = smov %s676_s11  ;;  %s939_s11 = smov %s751_s18 }
 0x1c5   : > { %s940_s12 = smov %s740_s15  ;;  %14 = sbr.rel (!%p12_p3) target bundleno = 3 (0x3), region = 66 }
 0x1cc   :  { %487 = vsyncpa [#allocation3], 1 }
 0x1cd   :  { %489 = vsyncpa [#allocation3 + $0x1], 1 }

</bundles_post_ra>
